<compile_context>
chip_gen: v7x
topology: tpu7x:2x2x1
jax: 0.10.0
libtpu: 0.0.40
codegen_flags: <defaults>
</compile_context>

<pallas_src>
import jax
import jax.numpy as jnp
from jax import lax
from jax.experimental import pallas as pl
from jax.experimental.pallas import tpu as pltpu


def _round_up(x, m):
    return ((x + m - 1) // m) * m


def fasttext2_kernel(ids_ref, emb_ref, w1_ref, b1_ref, w2_ref, b2_ref,
                     out_ref):
    # ids_ref : (TB, S)    int32  VMEM
    # emb_ref : (Vpad, E)  f32    VMEM (vocab rows zero-padded to Vpad)
    # w1      : (E, H)     b1: (1, H)
    # w2      : (H, CP)    b2: (1, CP)     (CP = classes padded to 128 lanes)
    # out_ref : (TB, CP)   f32
    TB, S = ids_ref.shape
    Vpad = emb_ref.shape[0]

    ids = ids_ref[...]                                       # (TB, S)
    col = lax.broadcasted_iota(jnp.int32, (TB, Vpad), 1)     # vocab id per lane

    # counts[b, v] = #{s : ids[b, s] == v}.  Ids outside [0, Vpad) match
    # nothing / zero-padded rows, so they contribute 0 (PyTorch would raise
    # on such ids anyway); padded batch rows (id 0) are sliced off outside.
    counts = jnp.zeros((TB, Vpad), jnp.float32)
    for s in range(S):                                       # S is small & static
        tok = ids[:, s:s + 1]                                # (TB, 1)
        counts = counts + (tok == col).astype(jnp.float32)

    # mean over the sequence == (counts / S) @ embedding_table  (one MXU matmul)
    pooled = jnp.dot(counts * jnp.float32(1.0 / S), emb_ref[...],
                     preferred_element_type=jnp.float32)     # (TB, E)

    # 2-layer MLP (MXU matmuls, f32 accumulation)
    h = jnp.dot(pooled, w1_ref[...],
                preferred_element_type=jnp.float32) + b1_ref[...]
    h = jnp.maximum(h, 0.0)                                  # ReLU
    out = jnp.dot(h, w2_ref[...],
                  preferred_element_type=jnp.float32) + b2_ref[...]
    out_ref[...] = out.astype(out_ref.dtype)


def fasttext2_forward(token_ids, emb_table, w1, b1, w2, b2):
    """token_ids: (B, S) int. Returns logits (B, C) float32."""
    B, S = token_ids.shape
    Vp1, E = emb_table.shape
    H = w1.shape[1]
    C = w2.shape[1]
    LANES, SUB = 128, 8

    # Vocab rows padded to a lane multiple so (TB, Vpad) @ (Vpad, E) is an
    # aligned MXU matmul; padded rows are zero.
    Vpad = _round_up(Vp1, LANES)
    embp = jnp.zeros((Vpad, E), emb_table.dtype).at[:Vp1, :].set(emb_table)

    # Lane-dense output: pad classes to a multiple of 128 lanes.
    CP = _round_up(C, LANES)
    w2p = jnp.zeros((H, CP), w2.dtype).at[:, :C].set(w2)
    b2p = jnp.zeros((1, CP), b2.dtype).at[:, :C].set(b2)

    # Batch tiling: keep >= 2 grid steps when B allows it so the "parallel"
    # axis can shard across both TensorCores on v7x.
    TB = min(128, max(SUB, _round_up(pl.cdiv(B, 2), SUB)))
    B_pad = _round_up(B, TB)
    ids = token_ids.astype(jnp.int32)
    if B_pad != B:
        ids = jnp.concatenate(
            [ids, jnp.zeros((B_pad - B, S), jnp.int32)], axis=0)
    nbt = B_pad // TB

    grid_spec = pltpu.PrefetchScalarGridSpec(
        num_scalar_prefetch=0,
        grid=(nbt,),
        in_specs=[
            pl.BlockSpec((TB, S), lambda bt: (bt, 0)),      # token ids (VMEM)
            pl.BlockSpec((Vpad, E), lambda bt: (0, 0)),     # embedding table
            pl.BlockSpec((E, H), lambda bt: (0, 0)),        # w1
            pl.BlockSpec((1, H), lambda bt: (0, 0)),        # b1
            pl.BlockSpec((H, CP), lambda bt: (0, 0)),       # w2 (padded)
            pl.BlockSpec((1, CP), lambda bt: (0, 0)),       # b2 (padded)
        ],
        out_specs=pl.BlockSpec((TB, CP), lambda bt: (bt, 0)),
    )

    out_padded = pl.pallas_call(
        fasttext2_kernel,
        out_shape=jax.ShapeDtypeStruct((B_pad, CP), jnp.float32),
        grid_spec=grid_spec,
        compiler_params=pltpu.CompilerParams(
            dimension_semantics=("parallel",)),   # v7x: shard batch over 2 TCs
    )(ids, embp, w1, b1, w2p, b2p)

    return out_padded[:B, :C]


if __name__ == "__main__":
    # Small, deterministic config consistent with the module's __init__.
    vocab_size = 100
    embedding_dim = 128   # E
    hidden = 128          # fixed 128 in the module
    class_num = 16        # C
    batch = 8             # B
    seq_len = 16          # S

    key = jax.random.PRNGKey(0)
    k_emb, k_w1, k_b1, k_w2, k_b2, k_tok = jax.random.split(key, 6)

    emb_table = jax.random.normal(k_emb, (vocab_size + 1, embedding_dim),
                                  dtype=jnp.float32) * 0.1
    # Linear weights stored as (in, out) == W.T of PyTorch's (out, in).
    w1 = jax.random.normal(k_w1, (embedding_dim, hidden), jnp.float32) * 0.05
    b1 = jax.random.normal(k_b1, (1, hidden), jnp.float32) * 0.01
    w2 = jax.random.normal(k_w2, (hidden, class_num), jnp.float32) * 0.05
    b2 = jax.random.normal(k_b2, (1, class_num), jnp.float32) * 0.01

    token_ids = jax.random.randint(k_tok, (batch, seq_len), 0, vocab_size + 1,
                                   dtype=jnp.int32)

    fwd = jax.jit(fasttext2_forward)
    out = fwd(token_ids, emb_table, w1, b1, w2, b2)
    out = jax.block_until_ready(out)

    # Pure-JAX reference check (same semantics as the PyTorch forward).
    # Pooling-as-matmul changes the f32 summation order slightly -> 1e-4 tol.
    x_emb = jnp.take(emb_table, token_ids, axis=0)
    ref = jnp.maximum(jnp.mean(x_emb, axis=1) @ w1 + b1, 0.0) @ w2 + b2
    assert out.shape == (batch, class_num)
    assert jnp.allclose(out, ref, atol=1e-4, rtol=1e-4), \
        float(jnp.max(jnp.abs(out - ref)))

    print("KERNEL_OK")
</pallas_src>

<mosaic_0001>
module attributes {stable_mosaic.version = 11 : i64} {
  func.func @fasttext2_kernel(%arg0: i32, %arg1: memref<8x16xi32, #tpu.memory_space<vmem>>, %arg2: memref<128x128xf32, #tpu.memory_space<vmem>>, %arg3: memref<128x128xf32, #tpu.memory_space<vmem>>, %arg4: memref<1x128xf32, #tpu.memory_space<vmem>>, %arg5: memref<128x128xf32, #tpu.memory_space<vmem>>, %arg6: memref<1x128xf32, #tpu.memory_space<vmem>>, %arg7: memref<8x128xf32, #tpu.memory_space<vmem>>) attributes {dimension_semantics = [#tpu.dimension_semantics<parallel>], iteration_bounds = array<i64: 1>, scalar_prefetch = 0 : i64, scratch_operands = 0 : i64, tpu.core_type = #tpu.core_type<tc>, window_params = [{transform_indices = @transform_0, window_bounds = array<i64: 8, 16>}, {pipeline_mode = #tpu.pipeline_mode<synchronous>, transform_indices = @transform_1, window_bounds = array<i64: 128, 128>}, {pipeline_mode = #tpu.pipeline_mode<synchronous>, transform_indices = @transform_2, window_bounds = array<i64: 128, 128>}, {pipeline_mode = #tpu.pipeline_mode<synchronous>, transform_indices = @transform_3, window_bounds = array<i64: 1, 128>}, {pipeline_mode = #tpu.pipeline_mode<synchronous>, transform_indices = @transform_4, window_bounds = array<i64: 128, 128>}, {pipeline_mode = #tpu.pipeline_mode<synchronous>, transform_indices = @transform_5, window_bounds = array<i64: 1, 128>}, {transform_indices = @transform_6, window_bounds = array<i64: 8, 128>}]} {
    %c0 = arith.constant 0 : index
    %c0_0 = arith.constant 0 : index
    %0 = vector.load %arg1[%c0, %c0_0] : memref<8x16xi32, #tpu.memory_space<vmem>>, vector<8x16xi32>
    %1 = tpu.iota {dimensions = array<i32: 1>} : vector<8x128xi32>
    %cst = arith.constant 0.000000e+00 : f32
    %2 = vector.broadcast %cst : f32 to vector<8x128xf32>
    %3 = vector.extract_strided_slice %0 {offsets = [0, 0], sizes = [8, 1], strides = [1, 1]} : vector<8x16xi32> to vector<8x1xi32>
    %4 = vector.broadcast %3 : vector<8x1xi32> to vector<8x128xi32>
    %5 = arith.cmpi eq, %4, %1 : vector<8x128xi32>
    %6 = arith.extui %5 : vector<8x128xi1> to vector<8x128xi32>
    %7 = arith.sitofp %6 : vector<8x128xi32> to vector<8x128xf32>
    %8 = arith.addf %2, %7 : vector<8x128xf32>
    %9 = vector.extract_strided_slice %0 {offsets = [0, 1], sizes = [8, 1], strides = [1, 1]} : vector<8x16xi32> to vector<8x1xi32>
    %10 = vector.broadcast %9 : vector<8x1xi32> to vector<8x128xi32>
    %11 = arith.cmpi eq, %10, %1 : vector<8x128xi32>
    %12 = arith.extui %11 : vector<8x128xi1> to vector<8x128xi32>
    %13 = arith.sitofp %12 : vector<8x128xi32> to vector<8x128xf32>
    %14 = arith.addf %8, %13 : vector<8x128xf32>
    %15 = vector.extract_strided_slice %0 {offsets = [0, 2], sizes = [8, 1], strides = [1, 1]} : vector<8x16xi32> to vector<8x1xi32>
    %16 = vector.broadcast %15 : vector<8x1xi32> to vector<8x128xi32>
    %17 = arith.cmpi eq, %16, %1 : vector<8x128xi32>
    %18 = arith.extui %17 : vector<8x128xi1> to vector<8x128xi32>
    %19 = arith.sitofp %18 : vector<8x128xi32> to vector<8x128xf32>
    %20 = arith.addf %14, %19 : vector<8x128xf32>
    %21 = vector.extract_strided_slice %0 {offsets = [0, 3], sizes = [8, 1], strides = [1, 1]} : vector<8x16xi32> to vector<8x1xi32>
    %22 = vector.broadcast %21 : vector<8x1xi32> to vector<8x128xi32>
    %23 = arith.cmpi eq, %22, %1 : vector<8x128xi32>
    %24 = arith.extui %23 : vector<8x128xi1> to vector<8x128xi32>
    %25 = arith.sitofp %24 : vector<8x128xi32> to vector<8x128xf32>
    %26 = arith.addf %20, %25 : vector<8x128xf32>
    %27 = vector.extract_strided_slice %0 {offsets = [0, 4], sizes = [8, 1], strides = [1, 1]} : vector<8x16xi32> to vector<8x1xi32>
    %28 = vector.broadcast %27 : vector<8x1xi32> to vector<8x128xi32>
    %29 = arith.cmpi eq, %28, %1 : vector<8x128xi32>
    %30 = arith.extui %29 : vector<8x128xi1> to vector<8x128xi32>
    %31 = arith.sitofp %30 : vector<8x128xi32> to vector<8x128xf32>
    %32 = arith.addf %26, %31 : vector<8x128xf32>
    %33 = vector.extract_strided_slice %0 {offsets = [0, 5], sizes = [8, 1], strides = [1, 1]} : vector<8x16xi32> to vector<8x1xi32>
    %34 = vector.broadcast %33 : vector<8x1xi32> to vector<8x128xi32>
    %35 = arith.cmpi eq, %34, %1 : vector<8x128xi32>
    %36 = arith.extui %35 : vector<8x128xi1> to vector<8x128xi32>
    %37 = arith.sitofp %36 : vector<8x128xi32> to vector<8x128xf32>
    %38 = arith.addf %32, %37 : vector<8x128xf32>
    %39 = vector.extract_strided_slice %0 {offsets = [0, 6], sizes = [8, 1], strides = [1, 1]} : vector<8x16xi32> to vector<8x1xi32>
    %40 = vector.broadcast %39 : vector<8x1xi32> to vector<8x128xi32>
    %41 = arith.cmpi eq, %40, %1 : vector<8x128xi32>
    %42 = arith.extui %41 : vector<8x128xi1> to vector<8x128xi32>
    %43 = arith.sitofp %42 : vector<8x128xi32> to vector<8x128xf32>
    %44 = arith.addf %38, %43 : vector<8x128xf32>
    %45 = vector.extract_strided_slice %0 {offsets = [0, 7], sizes = [8, 1], strides = [1, 1]} : vector<8x16xi32> to vector<8x1xi32>
    %46 = vector.broadcast %45 : vector<8x1xi32> to vector<8x128xi32>
    %47 = arith.cmpi eq, %46, %1 : vector<8x128xi32>
    %48 = arith.extui %47 : vector<8x128xi1> to vector<8x128xi32>
    %49 = arith.sitofp %48 : vector<8x128xi32> to vector<8x128xf32>
    %50 = arith.addf %44, %49 : vector<8x128xf32>
    %51 = vector.extract_strided_slice %0 {offsets = [0, 8], sizes = [8, 1], strides = [1, 1]} : vector<8x16xi32> to vector<8x1xi32>
    %52 = vector.broadcast %51 : vector<8x1xi32> to vector<8x128xi32>
    %53 = arith.cmpi eq, %52, %1 : vector<8x128xi32>
    %54 = arith.extui %53 : vector<8x128xi1> to vector<8x128xi32>
    %55 = arith.sitofp %54 : vector<8x128xi32> to vector<8x128xf32>
    %56 = arith.addf %50, %55 : vector<8x128xf32>
    %57 = vector.extract_strided_slice %0 {offsets = [0, 9], sizes = [8, 1], strides = [1, 1]} : vector<8x16xi32> to vector<8x1xi32>
    %58 = vector.broadcast %57 : vector<8x1xi32> to vector<8x128xi32>
    %59 = arith.cmpi eq, %58, %1 : vector<8x128xi32>
    %60 = arith.extui %59 : vector<8x128xi1> to vector<8x128xi32>
    %61 = arith.sitofp %60 : vector<8x128xi32> to vector<8x128xf32>
    %62 = arith.addf %56, %61 : vector<8x128xf32>
    %63 = vector.extract_strided_slice %0 {offsets = [0, 10], sizes = [8, 1], strides = [1, 1]} : vector<8x16xi32> to vector<8x1xi32>
    %64 = vector.broadcast %63 : vector<8x1xi32> to vector<8x128xi32>
    %65 = arith.cmpi eq, %64, %1 : vector<8x128xi32>
    %66 = arith.extui %65 : vector<8x128xi1> to vector<8x128xi32>
    %67 = arith.sitofp %66 : vector<8x128xi32> to vector<8x128xf32>
    %68 = arith.addf %62, %67 : vector<8x128xf32>
    %69 = vector.extract_strided_slice %0 {offsets = [0, 11], sizes = [8, 1], strides = [1, 1]} : vector<8x16xi32> to vector<8x1xi32>
    %70 = vector.broadcast %69 : vector<8x1xi32> to vector<8x128xi32>
    %71 = arith.cmpi eq, %70, %1 : vector<8x128xi32>
    %72 = arith.extui %71 : vector<8x128xi1> to vector<8x128xi32>
    %73 = arith.sitofp %72 : vector<8x128xi32> to vector<8x128xf32>
    %74 = arith.addf %68, %73 : vector<8x128xf32>
    %75 = vector.extract_strided_slice %0 {offsets = [0, 12], sizes = [8, 1], strides = [1, 1]} : vector<8x16xi32> to vector<8x1xi32>
    %76 = vector.broadcast %75 : vector<8x1xi32> to vector<8x128xi32>
    %77 = arith.cmpi eq, %76, %1 : vector<8x128xi32>
    %78 = arith.extui %77 : vector<8x128xi1> to vector<8x128xi32>
    %79 = arith.sitofp %78 : vector<8x128xi32> to vector<8x128xf32>
    %80 = arith.addf %74, %79 : vector<8x128xf32>
    %81 = vector.extract_strided_slice %0 {offsets = [0, 13], sizes = [8, 1], strides = [1, 1]} : vector<8x16xi32> to vector<8x1xi32>
    %82 = vector.broadcast %81 : vector<8x1xi32> to vector<8x128xi32>
    %83 = arith.cmpi eq, %82, %1 : vector<8x128xi32>
    %84 = arith.extui %83 : vector<8x128xi1> to vector<8x128xi32>
    %85 = arith.sitofp %84 : vector<8x128xi32> to vector<8x128xf32>
    %86 = arith.addf %80, %85 : vector<8x128xf32>
    %87 = vector.extract_strided_slice %0 {offsets = [0, 14], sizes = [8, 1], strides = [1, 1]} : vector<8x16xi32> to vector<8x1xi32>
    %88 = vector.broadcast %87 : vector<8x1xi32> to vector<8x128xi32>
    %89 = arith.cmpi eq, %88, %1 : vector<8x128xi32>
    %90 = arith.extui %89 : vector<8x128xi1> to vector<8x128xi32>
    %91 = arith.sitofp %90 : vector<8x128xi32> to vector<8x128xf32>
    %92 = arith.addf %86, %91 : vector<8x128xf32>
    %93 = vector.extract_strided_slice %0 {offsets = [0, 15], sizes = [8, 1], strides = [1, 1]} : vector<8x16xi32> to vector<8x1xi32>
    %94 = vector.broadcast %93 : vector<8x1xi32> to vector<8x128xi32>
    %95 = arith.cmpi eq, %94, %1 : vector<8x128xi32>
    %96 = arith.extui %95 : vector<8x128xi1> to vector<8x128xi32>
    %97 = arith.sitofp %96 : vector<8x128xi32> to vector<8x128xf32>
    %98 = arith.addf %92, %97 : vector<8x128xf32>
    %cst_1 = arith.constant 6.250000e-02 : f32
    %99 = vector.broadcast %cst_1 : f32 to vector<8x128xf32>
    %100 = arith.mulf %98, %99 : vector<8x128xf32>
    %c0_2 = arith.constant 0 : index
    %c0_3 = arith.constant 0 : index
    %101 = vector.load %arg2[%c0_2, %c0_3] : memref<128x128xf32, #tpu.memory_space<vmem>>, vector<128x128xf32>
    %cst_4 = arith.constant dense<0.000000e+00> : vector<8x128xf32>
    %102 = tpu.matmul %100, %101, %cst_4 {dimension_numbers = #tpu.dot_dimension_numbers<[1], [0], [0], [1], [0, 0, 1, 1], [], []>} : vector<8x128xf32>, vector<128x128xf32>, vector<8x128xf32> -> vector<8x128xf32>
    %c0_5 = arith.constant 0 : index
    %c0_6 = arith.constant 0 : index
    %103 = vector.load %arg3[%c0_5, %c0_6] : memref<128x128xf32, #tpu.memory_space<vmem>>, vector<128x128xf32>
    %cst_7 = arith.constant dense<0.000000e+00> : vector<8x128xf32>
    %104 = tpu.matmul %102, %103, %cst_7 {dimension_numbers = #tpu.dot_dimension_numbers<[1], [0], [0], [1], [0, 0, 1, 1], [], []>} : vector<8x128xf32>, vector<128x128xf32>, vector<8x128xf32> -> vector<8x128xf32>
    %c0_8 = arith.constant 0 : index
    %c0_9 = arith.constant 0 : index
    %105 = vector.load %arg4[%c0_8, %c0_9] : memref<1x128xf32, #tpu.memory_space<vmem>>, vector<1x128xf32>
    %106 = vector.broadcast %105 : vector<1x128xf32> to vector<8x128xf32>
    %107 = arith.addf %104, %106 : vector<8x128xf32>
    %cst_10 = arith.constant 0.000000e+00 : f32
    %108 = vector.broadcast %cst_10 : f32 to vector<8x128xf32>
    %109 = arith.maximumf %107, %108 : vector<8x128xf32>
    %c0_11 = arith.constant 0 : index
    %c0_12 = arith.constant 0 : index
    %110 = vector.load %arg5[%c0_11, %c0_12] : memref<128x128xf32, #tpu.memory_space<vmem>>, vector<128x128xf32>
    %cst_13 = arith.constant dense<0.000000e+00> : vector<8x128xf32>
    %111 = tpu.matmul %109, %110, %cst_13 {dimension_numbers = #tpu.dot_dimension_numbers<[1], [0], [0], [1], [0, 0, 1, 1], [], []>} : vector<8x128xf32>, vector<128x128xf32>, vector<8x128xf32> -> vector<8x128xf32>
    %c0_14 = arith.constant 0 : index
    %c0_15 = arith.constant 0 : index
    %112 = vector.load %arg6[%c0_14, %c0_15] : memref<1x128xf32, #tpu.memory_space<vmem>>, vector<1x128xf32>
    %113 = vector.broadcast %112 : vector<1x128xf32> to vector<8x128xf32>
    %114 = arith.addf %111, %113 : vector<8x128xf32>
    %c0_16 = arith.constant 0 : index
    %c0_17 = arith.constant 0 : index
    %115 = vector.load %arg7[%c0_16, %c0_17] : memref<8x128xf32, #tpu.memory_space<vmem>>, vector<8x128xf32>
    tpu.vector_store %arg7[%c0_16, %c0_17], %114 {strides = array<i32>} : memref<8x128xf32, #tpu.memory_space<vmem>>, vector<8x128xf32>,
    return
  }
  func.func @transform_0(%arg0: i32) -> (i32, i32) {
    %c0_i32 = arith.constant 0 : i32
    %c0_i32_0 = arith.constant 0 : i32
    return %arg0, %c0_i32 : i32, i32
  }
  func.func @transform_1(%arg0: i32) -> (i32, i32) {
    %c0_i32 = arith.constant 0 : i32
    %c0_i32_0 = arith.constant 0 : i32
    %c0_i32_1 = arith.constant 0 : i32
    return %c0_i32, %c0_i32_0 : i32, i32
  }
  func.func @transform_2(%arg0: i32) -> (i32, i32) {
    %c0_i32 = arith.constant 0 : i32
    %c0_i32_0 = arith.constant 0 : i32
    %c0_i32_1 = arith.constant 0 : i32
    return %c0_i32, %c0_i32_0 : i32, i32
  }
  func.func @transform_3(%arg0: i32) -> (i32, i32) {
    %c0_i32 = arith.constant 0 : i32
    %c0_i32_0 = arith.constant 0 : i32
    %c0_i32_1 = arith.constant 0 : i32
    return %c0_i32, %c0_i32_0 : i32, i32
  }
  func.func @transform_4(%arg0: i32) -> (i32, i32) {
    %c0_i32 = arith.constant 0 : i32
    %c0_i32_0 = arith.constant 0 : i32
    %c0_i32_1 = arith.constant 0 : i32
    return %c0_i32, %c0_i32_0 : i32, i32
  }
  func.func @transform_5(%arg0: i32) -> (i32, i32) {
    %c0_i32 = arith.constant 0 : i32
    %c0_i32_0 = arith.constant 0 : i32
    %c0_i32_1 = arith.constant 0 : i32
    return %c0_i32, %c0_i32_0 : i32, i32
  }
  func.func @transform_6(%arg0: i32) -> (i32, i32) {
    %c0_i32 = arith.constant 0 : i32
    %c0_i32_0 = arith.constant 0 : i32
    return %arg0, %c0_i32 : i32, i32
  }
}

</mosaic_0001>

<bundles_post_ra>
// kernel: fasttext2_forward.1
= control target key start
LH: loop header
LB: loop body
LE: loop exit
PB: predicated region body
PF: predicated region fallthrough
CT: control target
= control target key end

     0   :  { %v735_v1 = vmov 2   ;;  %v736_v2 = vmov 0   ;;  %s1037_s0 = inlined_call_operand.vmem [shape: s32[8,16], index: 0, kind: input, shape index: {}]   ;;  %s1038_s1 = inlined_call_operand.vmem [shape: f32[128,128], index: 1, kind: input, shape index: {}]   ;;  %s1039_s2 = inlined_call_operand.vmem [shape: f32[128,128], index: 2, kind: input, shape index: {}]   ;;  %s1040_s3 = inlined_call_operand.vmem [shape: f32[1,128], index: 3, kind: input, shape index: {}]   ;;  %s1041_s4 = inlined_call_operand.vmem [shape: f32[128,128], index: 4, kind: input, shape index: {}]   ;;  %s1042_s5 = inlined_call_operand.vmem [shape: f32[1,128], index: 5, kind: input, shape index: {}]   ;;  %s1043_s6 = inlined_call_operand.hbm [shape: f32[8,128], index: 6, kind: output, shape index: {}]  }
   0x1   :  { %v793_v0 = vld [vmem:[%s1037_s0] sm:$0xff]  ;;  %696 = vset.pattern.permute.xlu1 %v735_v1  ;;  %694 = vset.pattern.permute.xlu0 %v736_v2 }
   0x2   :  { %11 = vsyncpa [#allocation3], 0  ;;  %42 = vperm.xlu1 %696, %v793_v0   ;;  %28 = vperm.xlu0 %694, %v793_v0   ;;  %v737_v3 = vmov 3   ;;  %v738_v4 = vmov 1   ;;  %v739_v5 = vmov 4   ;;  %v740_v6 = vmov 5  }
   0x3   :  { %v741_v7 = vmov 6   ;;  %v742_v8 = vmov 8   ;;  %v140_v9 = vld [vmem:[%s1038_s1] sm:$0xff]  ;;  %v141_v10 = vld [vmem:[%s1038_s1 + $0x8] sm:$0xff]  ;;  %v743_v11 = vmov 0.0|0.0   ;;  %v744_v13 = vmov 7  }
   0x4   :  { %602 = vmatprep.subr.bf16.mxu0 %v743_v11  ;;  %v603_v12 = vpack.c.bf16 %v141_v10, %v140_v9  ;;  %626 = vmatprep.subr.bf16.mxu1 %v743_v11  ;;  %v745_v14 = vmov 11   ;;  %v142_v15 = vld [vmem:[%s1038_s1 + $0x10] sm:$0xff]  ;;  %v143_v16 = vld [vmem:[%s1038_s1 + $0x18] sm:$0xff]  ;;  %v746_v18 = vmov 9   ;;  %v747_v19 = vmov 14   ;;  %v144_v20 = vld [vmem:[%s1038_s1 + $0x20] sm:$0xff] }
   0x5   :  { %v606_v17 = vpack.c.bf16 %v143_v16, %v142_v15  ;;  %v145_v21 = vld [vmem:[%s1038_s1 + $0x28] sm:$0xff]  ;;  %v748_v23 = vmov 10   ;;  %v146_v24 = vld [vmem:[%s1038_s1 + $0x30] sm:$0xff]  ;;  %v147_v25 = vld [vmem:[%s1038_s1 + $0x38] sm:$0xff]  ;;  %v749_v26 = vmov 15   ;;  %v750_v30 = vmov 12  }
   0x6   :  { %697 = vset.pattern.permute.xlu1 %v737_v3  ;;  %695 = vset.pattern.permute.xlu0 %v738_v4  ;;  %v609_v22 = vpack.c.bf16 %v145_v21, %v144_v20  ;;  %v612_v27 = vpack.c.bf16 %v147_v25, %v146_v24  ;;  %v148_v28 = vld [vmem:[%s1038_s1 + $0x40] sm:$0xff]  ;;  %v149_v29 = vld [vmem:[%s1038_s1 + $0x48] sm:$0xff]  ;;  %v150_v32 = vld [vmem:[%s1038_s1 + $0x50] sm:$0xff]  ;;  %v751_v35 = vmov 13   ;;  %vm752_vm0 = vmmov 0   ;;  %s754_s18 = smov [#allocation2]  }
   0x7   :  { %49 = vperm.xlu1 %697, %v793_v0   ;;  %35 = vperm.xlu0 %695, %v793_v0   ;;  %v615_v31 = vpack.c.bf16 %v149_v29, %v148_v28  ;;  %v151_v33 = vld [vmem:[%s1038_s1 + $0x58] sm:$0xff]  ;;  %v152_v36 = vld [vmem:[%s1038_s1 + $0x60] sm:$0xff]  ;;  %v153_v37 = vld [vmem:[%s1038_s1 + $0x68] sm:$0xff]  ;;  %v753_v42 = vmov 0.0   ;;  %v25_v3 = vlaneseq  ;;  %s420_s19 = sshll.u32 %s754_s18, 4  ;;  %s421_s19 = int_to_ptr.vmem [resolvable:$true] %s420_s19 }
   0x8   :  { %604 = vmatpush3.bf16.msra.mxu0 %v603_v12  ;;  %v618_v34 = vpack.c.bf16 %v151_v33, %v150_v32  ;;  %v621_v38 = vpack.c.bf16 %v153_v37, %v152_v36  ;;  %v154_v39 = vld [vmem:[%s1038_s1 + $0x70] sm:$0xff]  ;;  %v155_v40 = vld [vmem:[%s1038_s1 + $0x78] sm:$0xff]  ;;  %529 = vmatprep.mubr.msk.f32.mxu0 %vm752_vm0, %v753_v42  ;;  %v226_v43 = vld [vmem:[%s1039_s2] sm:$0xff]  ;;  %p716_p1 = scmp.lt.s32.totalorder %s421_s19, %s421_s19 }
   0x9   :  { %605 = vmatprep.subr.bf16.mxu0 %v743_v11  ;;  %v624_v41 = vpack.c.bf16 %v155_v40, %v154_v39  ;;  %v227_v44 = vld [vmem:[%s1039_s2 + $0x8] sm:$0xff]  ;;  %v228_v45 = vld [vmem:[%s1039_s2 + $0x10] sm:$0xff]  ;;  %564 = vmatprep.mubr.msk.f32.mxu1 %vm752_vm0, %v753_v42  ;;  %v229_v47 = vld [vmem:[%s1039_s2 + $0x18] sm:$0xff]  ;;  %v928_v4 = vand.u32 127, %v25_v3 }
   0xa   :  { %v627_v46 = vpack.c.bf16 %v227_v44, %v226_v43  ;;  %v630_v48 = vpack.c.bf16 %v229_v47, %v228_v45  ;;  %v230_v49 = vld [vmem:[%s1039_s2 + $0x20] sm:$0xff]  ;;  %v231_v50 = vld [vmem:[%s1039_s2 + $0x28] sm:$0xff]  ;;  %v232_v52 = vld [vmem:[%s1039_s2 + $0x30] sm:$0xff] }
   0xb   :  { %698 = vset.pattern.permute.xlu1 %v739_v5  ;;  %699 = vset.pattern.permute.xlu0 %v740_v6  ;;  %v633_v51 = vpack.c.bf16 %v231_v50, %v230_v49  ;;  %v233_v53 = vld [vmem:[%s1039_s2 + $0x38] sm:$0xff]  ;;  %v234_v55 = vld [vmem:[%s1039_s2 + $0x40] sm:$0xff]  ;;  %v235_v56 = vld [vmem:[%s1039_s2 + $0x48] sm:$0xff] }
   0xc   :  { %56 = vperm.xlu1 %698, %v793_v0   ;;  %63 = vperm.xlu0 %699, %v793_v0   ;;  %v636_v54 = vpack.c.bf16 %v233_v53, %v232_v52  ;;  %v639_v57 = vpack.c.bf16 %v235_v56, %v234_v55  ;;  %v236_v58 = vld [vmem:[%s1039_s2 + $0x50] sm:$0xff]  ;;  %v237_v59 = vld [vmem:[%s1039_s2 + $0x58] sm:$0xff]  ;;  %v238_v61 = vld [vmem:[%s1039_s2 + $0x60] sm:$0xff] }
   0xd   :  { %607 = vmatpush3.bf16.msra.mxu0 %v606_v17  ;;  %628 = vmatpush3.bf16.msra.mxu1 %v627_v46  ;;  %v642_v60 = vpack.c.bf16 %v237_v59, %v236_v58  ;;  %v239_v62 = vld [vmem:[%s1039_s2 + $0x68] sm:$0xff]  ;;  %v241_v1 = vld [vmem:[%s1039_s2 + $0x78] sm:$0xff]  ;;  %v320_v55 = vld [vmem:[%s1041_s4] sm:$0xff] }
   0xe   :  { %608 = vmatprep.subr.bf16.mxu0 %v743_v11  ;;  %629 = vmatprep.subr.bf16.mxu1 %v743_v11  ;;  %v645_v63 = vpack.c.bf16 %v239_v62, %v238_v61  ;;  %v321_v56 = vld [vmem:[%s1041_s4 + $0x8] sm:$0xff]  ;;  %v323_v59 = vld [vmem:[%s1041_s4 + $0x18] sm:$0xff] }
   0xf   :  { %v651_v58 = vpack.c.bf16 %v321_v56, %v320_v55  ;;  %v325_v61 = vld [vmem:[%s1041_s4 + $0x28] sm:$0xff] }
  0x10   :  { %700 = vset.pattern.permute.xlu1 %v741_v7  ;;  %702 = vset.pattern.permute.xlu0 %v742_v8  ;;  %v329_v3 = vld [vmem:[%s1041_s4 + $0x48] sm:$0xff] }
  0x11   :  { %70 = vperm.xlu1 %700, %v793_v0   ;;  %84 = vperm.xlu0 %702, %v793_v0  }
  0x12   :  { %610 = vmatpush3.bf16.msra.mxu0 %v609_v22  ;;  %631 = vmatpush3.bf16.msra.mxu1 %v630_v48 }
  0x13   :  { %611 = vmatprep.subr.bf16.mxu0 %v743_v11  ;;  %632 = vmatprep.subr.bf16.mxu1 %v743_v11 }
  0x15   :  { %701 = vset.pattern.permute.xlu1 %v744_v13  ;;  %705 = vset.pattern.permute.xlu0 %v745_v14 }
  0x16   :  { %77 = vperm.xlu1 %701, %v793_v0   ;;  %105 = vperm.xlu0 %705, %v793_v0  }
  0x17   :  { %613 = vmatpush3.bf16.msra.mxu0 %v612_v27  ;;  %634 = vmatpush3.bf16.msra.mxu1 %v633_v51 }
  0x18   :  { %614 = vmatprep.subr.bf16.mxu0 %v743_v11  ;;  %635 = vmatprep.subr.bf16.mxu1 %v743_v11 }
  0x1a   :  { %703 = vset.pattern.permute.xlu1 %v746_v18  ;;  %708 = vset.pattern.permute.xlu0 %v747_v19 }
  0x1b   :  { %91 = vperm.xlu1 %703, %v793_v0   ;;  %126 = vperm.xlu0 %708, %v793_v0  }
  0x1c   :  { %616 = vmatpush3.bf16.msra.mxu0 %v615_v31  ;;  %637 = vmatpush3.bf16.msra.mxu1 %v636_v54 }
  0x1d   :  { %617 = vmatprep.subr.bf16.mxu0 %v743_v11  ;;  %638 = vmatprep.subr.bf16.mxu1 %v743_v11 }
  0x1f   :  { %704 = vset.pattern.permute.xlu1 %v748_v23  ;;  %710 = vset.pattern.permute.xlu0 %v749_v26 }
  0x20   :  { %98 = vperm.xlu1 %704, %v793_v0   ;;  %619 = vmatpush3.bf16.msra.mxu0 %v618_v34 }
  0x21   :  { %620 = vmatprep.subr.bf16.mxu0 %v743_v11  ;;  %640 = vmatpush3.bf16.msra.mxu1 %v639_v57  ;;  %v322_v57 = vld [vmem:[%s1041_s4 + $0x10] sm:$0xff] }
  0x22   :  { %641 = vmatprep.subr.bf16.mxu1 %v743_v11 }
  0x24   :  { %706 = vset.pattern.permute.xlu1 %v750_v30  ;;  %622 = vmatpush3.bf16.msra.mxu0 %v621_v38 }
  0x25   :  { %112 = vperm.xlu1 %706, %v793_v0   ;;  %623 = vmatprep.subr.bf16.mxu0 %v743_v11 }
  0x26   :  { %643 = vmatpush3.bf16.msra.mxu1 %v642_v60  ;;  %v654_v60 = vpack.c.bf16 %v323_v59, %v322_v57 }
  0x27   :  { %644 = vmatprep.subr.bf16.mxu1 %v743_v11 }
  0x28   :  { %625 = vmatpush3.bf16.msra.mxu0 %v624_v41 }
  0x29   :  { %707 = vset.pattern.permute.xlu1 %v751_v35  ;;  %650 = vmatprep.subr.bf16.mxu0 %v743_v11 }
  0x2a   :  { %119 = vperm.xlu1 %707, %v793_v0   ;;  %646 = vmatpush3.bf16.msra.mxu1 %v645_v63  ;;  %v326_v63 = vld [vmem:[%s1041_s4 + $0x30] sm:$0xff] }
  0x2b   :  { %647 = vmatprep.subr.bf16.mxu1 %v743_v11 }
  0x2e   :  { %709 = vset.pattern.permute.xlu1 %v749_v26 }
  0x2f   :  { %133 = vperm.xlu1 %709, %v793_v0   ;;  %v240_v0 = vld [vmem:[%s1039_s2 + $0x70] sm:$0xff] }
  0x30   :  { %v648_v2 = vpack.c.bf16 %v241_v1, %v240_v0  ;;  %v327_v0 = vld [vmem:[%s1041_s4 + $0x38] sm:$0xff] }
  0x31   :  { %v660_v1 = vpack.c.bf16 %v327_v0, %v326_v63 }
  0x32   :  { %649 = vmatpush3.bf16.msra.mxu1 %v648_v2  ;;  %v328_v2 = vld [vmem:[%s1041_s4 + $0x40] sm:$0xff] }
  0x81   :  { %v43_v5 = vpop.permute.xlu1 %42  ;;  %v29_v6 = vpop.permute.xlu0 %28 }
  0x82   :  { %vm30_vm1 = vcmp.eq.s32.totalorder %v29_v6, %v928_v4  ;;  %vm44_vm2 = vcmp.eq.s32.totalorder %v43_v5, %v928_v4  ;;  %v330_v5 = vld [vmem:[%s1041_s4 + $0x50] sm:$0xff]  ;;  %v331_v6 = vld [vmem:[%s1041_s4 + $0x58] sm:$0xff] }
  0x83   :  { %v428_v7 = vsel %vm30_vm1, 1.0, %v753_v42  ;;  %v430_v13 = vsel %vm44_vm2, 1.0, %v753_v42 }
  0x86   :  { %v50_v8 = vpop.permute.xlu1 %49  ;;  %v36_v9 = vpop.permute.xlu0 %35 }
  0x87   :  { %vm37_vm3 = vcmp.eq.s32.totalorder %v36_v9, %v928_v4  ;;  %vm51_vm4 = vcmp.eq.s32.totalorder %v50_v8, %v928_v4  ;;  %v332_v8 = vld [vmem:[%s1041_s4 + $0x60] sm:$0xff]  ;;  %v333_v9 = vld [vmem:[%s1041_s4 + $0x68] sm:$0xff] }
  0x88   :  { %v429_v10 = vsel %vm37_vm3, 1.0, %v753_v42  ;;  %v431_v17 = vsel %vm51_vm4, 1.0, %v753_v42 }
  0x89   :  { %v40_v12 = vadd.f32 %v429_v10, %v428_v7  ;;  %v666_v7 = vpack.c.bf16 %v331_v6, %v330_v5  ;;  %v669_v10 = vpack.c.bf16 %v333_v9, %v332_v8 }
  0x8b   :  { %v47_v14 = vadd.f32 %v430_v13, %v40_v12  ;;  %v57_v15 = vpop.permute.xlu1 %56  ;;  %v64_v16 = vpop.permute.xlu0 %63 }
  0x8c   :  { %vm58_vm5 = vcmp.eq.s32.totalorder %v57_v15, %v928_v4  ;;  %vm65_vm6 = vcmp.eq.s32.totalorder %v64_v16, %v928_v4  ;;  %v335_v15 = vld [vmem:[%s1041_s4 + $0x78] sm:$0xff] }
  0x8d   :  { %v54_v18 = vadd.f32 %v431_v17, %v47_v14  ;;  %v432_v19 = vsel %vm58_vm5, 1.0, %v753_v42  ;;  %v433_v21 = vsel %vm65_vm6, 1.0, %v753_v42  ;;  %v334_v14 = vld [vmem:[%s1041_s4 + $0x70] sm:$0xff]  ;;  %v444_v17 = vld [vmem:[%s1040_s3] ss:$0 sm:$0xff] }
  0x8e   :  { %v672_v16 = vpack.c.bf16 %v335_v15, %v334_v14 }
  0x8f   :  { %v61_v20 = vadd.f32 %v432_v19, %v54_v18 }
  0x90   :  { %v71_v22 = vpop.permute.xlu1 %70  ;;  %v85_v25 = vpop.permute.xlu0 %84 }
  0x91   :  { %vm72_vm7 = vcmp.eq.s32.totalorder %v71_v22, %v928_v4  ;;  %v68_v23 = vadd.f32 %v433_v21, %v61_v20  ;;  %vm86_vm9 = vcmp.eq.s32.totalorder %v85_v25, %v928_v4  ;;  %v445_v21 = vld [vmem:[%s1042_s5] ss:$0 sm:$0xff] }
  0x92   :  { %v434_v24 = vsel %vm72_vm7, 1.0, %v753_v42  ;;  %v436_v30 = vsel %vm86_vm9, 1.0, %v753_v42 }
  0x93   :  { %v75_v27 = vadd.f32 %v434_v24, %v68_v23 }
  0x95   :  { %v78_v26 = vpop.permute.xlu1 %77  ;;  %v106_v34 = vpop.permute.xlu0 %105 }
  0x96   :  { %vm79_vm8 = vcmp.eq.s32.totalorder %v78_v26, %v928_v4  ;;  %vm107_vm12 = vcmp.eq.s32.totalorder %v106_v34, %v928_v4 }
  0x97   :  { %v435_v28 = vsel %vm79_vm8, 1.0, %v753_v42  ;;  %v439_v39 = vsel %vm107_vm12, 1.0, %v753_v42 }
  0x98   :  { %v82_v29 = vadd.f32 %v435_v28, %v75_v27 }
  0x9a   :  { %v92_v31 = vpop.permute.xlu1 %91  ;;  %v89_v32 = vadd.f32 %v436_v30, %v82_v29  ;;  %v127_v41 = vpop.permute.xlu0 %126 }
  0x9b   :  { %vm93_vm10 = vcmp.eq.s32.totalorder %v92_v31, %v928_v4  ;;  %vm128_vm14 = vcmp.eq.s32.totalorder %v127_v41, %v928_v4 }
  0x9c   :  { %v437_v33 = vsel %vm93_vm10, 1.0, %v753_v42  ;;  %v442_v48 = vsel %vm128_vm14, 1.0, %v753_v42 }
  0x9d   :  { %v96_v36 = vadd.f32 %v437_v33, %v89_v32 }
  0x9f   :  { %v99_v35 = vpop.permute.xlu1 %98 }
  0xa0   :  { %vm100_vm11 = vcmp.eq.s32.totalorder %v99_v35, %v928_v4 }
  0xa1   :  { %v438_v37 = vsel %vm100_vm11, 1.0, %v753_v42 }
  0xa2   :  { %v103_v38 = vadd.f32 %v438_v37, %v96_v36 }
  0xa4   :  { %v113_v40 = vpop.permute.xlu1 %112  ;;  %v110_v43 = vadd.f32 %v439_v39, %v103_v38 }
  0xa5   :  { %vm114_vm13 = vcmp.eq.s32.totalorder %v113_v40, %v928_v4 }
  0xa6   :  { %v440_v44 = vsel %vm114_vm13, 1.0, %v753_v42 }
  0xa7   :  { %v117_v46 = vadd.f32 %v440_v44, %v110_v43 }
  0xa9   :  { %v120_v45 = vpop.permute.xlu1 %119 }
  0xaa   :  { %vm121_vm15 = vcmp.eq.s32.totalorder %v120_v45, %v928_v4 }
  0xab   :  { %v441_v47 = vsel %vm121_vm15, 1.0, %v753_v42 }
  0xac   :  { %v124_v49 = vadd.f32 %v441_v47, %v117_v46 }
  0xae   :  { %v131_v50 = vadd.f32 %v442_v48, %v124_v49  ;;  %v134_v51 = vpop.permute.xlu1 %133 }
  0xaf   :  { %vm135_vm1 = vcmp.eq.s32.totalorder %v134_v51, %v928_v4  ;;  %v663_v4 = vpack.c.bf16 %v329_v3, %v328_v2 }
  0xb0   :  { %v443_v52 = vsel %vm135_vm1, 1.0, %v753_v42 }
  0xb1   :  { %v138_v53 = vadd.f32 %v443_v52, %v131_v50 }
  0xb3   :  { %v139_v54 = vmul.f32 0.0625, %v138_v53 }
  0xb5   :  { %530 = vmatmul.mubr.f32.vlgmr.msra.gmra.mrb[0].mxu0 %v139_v54 }
  0xb6   :  { %599 = vmatprep.mubr.msk.f32.mxu0 %vm752_vm0, %v753_v42  ;;  %652 = vmatpush3.bf16.msra.mxu0 %v651_v58  ;;  %v324_v42 = vld [vmem:[%s1041_s4 + $0x20] sm:$0xff]  ;;  %s711_s4 = scalar_lea.vmem %s421_s19, 128 }
  0xb7   :  { %653 = vmatprep.subr.bf16.mxu0 %v743_v11  ;;  %v657_v62 = vpack.c.bf16 %v325_v61, %v324_v42  ;;  %p712_p0 = scmp.ne.s32.totalorder %s421_s19, %s711_s4  ;;  %p717_p2 = scmp.lt.s32.totalorder %s711_s4, %s711_s4 }
  0xb9   :  { %p718_p3 = por %p717_p2, %p716_p1 }
  0xba   :  { %655 = vmatpush3.bf16.msra.mxu0 %v654_v60 }
  0xbb   :  { %656 = vmatprep.subr.bf16.mxu0 %v743_v11  ;;  %p719_p4 = pnand %p718_p3, %p712_p0 }
  0xbe   :  { %658 = vmatpush3.bf16.msra.mxu0 %v657_v62 }
  0xbf   :  { %659 = vmatprep.subr.bf16.mxu0 %v743_v11 }
  0xc2   :  { %661 = vmatpush3.bf16.msra.mxu0 %v660_v1 }
  0xc3   :  { %662 = vmatprep.subr.bf16.mxu0 %v743_v11 }
  0xc6   :  { %664 = vmatpush3.bf16.msra.mxu0 %v663_v4 }
  0xc7   :  { %665 = vmatprep.subr.bf16.mxu0 %v743_v11 }
  0xca   :  { %667 = vmatpush3.bf16.msra.mxu0 %v666_v7 }
  0xcb   :  { %668 = vmatprep.subr.bf16.mxu0 %v743_v11 }
  0xce   :  { %670 = vmatpush3.bf16.msra.mxu0 %v669_v10 }
  0xcf   :  { %671 = vmatprep.subr.bf16.mxu0 %v743_v11 }
  0xd2   :  { %673 = vmatpush3.bf16.msra.mxu0 %v672_v16 }
 0x188   :  { %v222_v12 = vpop.f32.mrb[0].mxu0 }
 0x189   :  { %v531_v13 = vpop.f32.mrb[1].mxu0  ;;  %565 = vmatmul.mubr.f32.vlgmr.msra.gmra.mrb[0].mxu1 %v222_v12 }
 0x25c   :  { %v315_v18 = vpop.f32.mrb[0].mxu1 }
 0x25d   :  { %v316_v19 = vadd.f32 %v444_v17, %v315_v18  ;;  %v566_v11 = vpop.f32.mrb[1].mxu1 }
 0x25f   :  { %v319_v20 = vmax.f32 %v316_v19, 0.0 }
 0x261   :  { %600 = vmatmul.mubr.f32.vlgmr.msra.gmra.mrb[2].mxu0 %v319_v20 }
 0x334   :  { %v409_v22 = vpop.f32.mrb[2].mxu0 }
 0x335   :  { %v410_v23 = vadd.f32 %v445_v21, %v409_v22  ;;  %v601_v24 = vpop.f32.mrb[3].mxu0 }
 0x337   :  { %413 = vst [vmem:[#allocation2] sm:$0xff] %v410_v23 }
 0x338   :  { %722 = shalt.err (!%p719_p4)
}
 0x339   :  { %s723_s21 = scalar_lea.hbm %s1043_s6, 128 }
 0x33a   :  { %p724_p5 = scmp.ne.s32.totalorder %s1043_s6, %s723_s21  ;;  %p727_p6 = scmp.lt.u32.totalorder %s723_s21, %s1043_s6 }
 0x33c   :  { %p729_p7 = pnand %p727_p6, %p724_p5 }
 0x33e   :  { %732 = shalt.err (!%p729_p7)
}
 0x33f   :  { %423 = dma.vmem_to_hbm [thread:$0]  %s421_s19, 128, %s1043_s6, [#allocation3]  }
 0x340   :  { %733 = dma.done.wait [#allocation3], 128  }
 0x341   :  { %734 = vsyncadd [#allocation3], 4294967168 }
 0x342   :  { %427 = vsyncpa [#allocation3], 1 }

</bundles_post_ra>
